<compile_context>
chip_gen: v7x
topology: tpu7x:2x2x1
jax: 0.10.0
libtpu: 0.0.40
codegen_flags: <defaults>
</compile_context>

<pallas_src>
import functools

import jax
import jax.numpy as jnp
from jax.experimental import pallas as pl
from jax.experimental.pallas import tpu as pltpu


def _round_up(n, m):
    return -(-n // m) * m


def _lr_kernel(x_ref, w_ref, b_ref, o_ref, *, label_dim):
    # x_ref: (TB, F) x.dtype      w_ref: (F, Lpad) bf16 (lane-dense, MXU (K, N))
    # b_ref: (1, Lpad) f32        o_ref: (TB, L)   x.dtype
    x = x_ref[...].astype(w_ref.dtype)             # in-kernel bf16 cast, hidden under DMA
    z = jnp.dot(x, w_ref[...], preferred_element_type=jnp.float32)
    z = z + b_ref[...]                             # f32 bias broadcast over batch
    zl = z[:, :label_dim]                          # keep real label lanes (starts at lane 0 -> no relayout)
    # sigmoid(z) = 0.5 * tanh(0.5 * z) + 0.5  -> single EUP transcendental.
    # NOTE: garbage rows of the ragged trailing batch block may produce NaN here;
    # harmless, those output rows are masked on store.
    y = 0.5 * jnp.tanh(0.5 * zl) + 0.5
    o_ref[...] = y.astype(o_ref.dtype)


def _pick_batch_tile(batch, feat, lpad, label_dim, x_itemsize, out_itemsize,
                     budget_bytes=10 * 1024 * 1024):
    """Largest batch tile whose double-buffered tiles + resident weight/bias +
    f32 temporaries fit a conservative scoped-VMEM budget (v5e default 16 MiB),
    capped so the batch grid has >= 2 steps (megacore split on v7x)."""
    cap = min(_round_up(batch, 8), max(8, _round_up(-(-batch // 2), 8)))
    for tb in (1024, 512, 256, 128, 64, 32, 16, 8):
        if tb > cap:
            continue
        need = (2 * tb * feat * x_itemsize            # x tiles, double-buffered
                + 2 * tb * label_dim * out_itemsize   # out tiles, double-buffered
                + 2 * lpad * feat * 2                 # resident bf16 weight (Pallas double-buffers it too)
                + 2 * lpad * 4                        # resident f32 bias
                + 3 * tb * lpad * 4)                  # f32 intermediates (z / tanh / result)
        if need <= budget_bytes:
            return tb
    return 8


def prepare_params(weight, bias, compute_dtype=jnp.bfloat16):
    """One-off param prep (call once per model, outside the hot path):
    torch-layout (L, F) weight -> lane-dense (F, Lpad) compute-dtype matrix,
    bias -> (1, Lpad) f32."""
    label_dim = weight.shape[0]
    lpad = _round_up(label_dim, 128)
    w = jnp.pad(weight.T.astype(compute_dtype), ((0, 0), (0, lpad - label_dim)))
    b = jnp.pad(bias.astype(jnp.float32), (0, lpad - label_dim)).reshape(1, lpad)
    return w, b


@functools.partial(jax.jit, static_argnames=("label_dim",))
def lr_classifier_prepared(x, w_prepped, b_prepped, label_dim):
    """y = sigmoid(x @ W.T + b) with pre-prepared (F, Lpad) / (1, Lpad) params."""
    B, F = x.shape
    lpad = w_prepped.shape[1]
    out_dtype = x.dtype
    tb = _pick_batch_tile(B, F, lpad, label_dim,
                          jnp.dtype(x.dtype).itemsize, jnp.dtype(out_dtype).itemsize)
    grid = (pl.cdiv(B, tb),)

    return pl.pallas_call(
        functools.partial(_lr_kernel, label_dim=label_dim),
        out_shape=jax.ShapeDtypeStruct((B, label_dim), out_dtype),
        grid=grid,
        in_specs=[
            pl.BlockSpec((tb, F), lambda i: (i, 0)),      # x: batch-tiled, pipelined
            pl.BlockSpec((F, lpad), lambda i: (0, 0)),    # weight: resident full block
            pl.BlockSpec((1, lpad), lambda i: (0, 0)),    # bias: resident full block
        ],
        out_specs=pl.BlockSpec((tb, label_dim), lambda i: (i, 0)),
        compiler_params=pltpu.CompilerParams(
            dimension_semantics=("parallel",),            # megacore split on v7x
        ),
    )(x, w_prepped, b_prepped)


def lr_classifier(x, weight, bias, compute_dtype=jnp.bfloat16):
    """Matches torch.nn.Linear(feature_dim, label_dim) + Sigmoid.

    x: (B, F), weight: (L, F) (PyTorch layout), bias: (L,). Returns (B, L) in x.dtype.
    """
    w_p, b_p = prepare_params(weight, bias, compute_dtype)
    return lr_classifier_prepared(x, w_p, b_p, weight.shape[0])


def _torch_linear_init(key, feature_dim, label_dim):
    # Deterministic init mimicking torch.nn.Linear default (U[-k, k], k = 1/sqrt(F)).
    k = 1.0 / jnp.sqrt(jnp.float32(feature_dim))
    wkey, bkey = jax.random.split(key)
    weight = jax.random.uniform(wkey, (label_dim, feature_dim),
                                minval=-k, maxval=k, dtype=jnp.float32)
    bias = jax.random.uniform(bkey, (label_dim,),
                              minval=-k, maxval=k, dtype=jnp.float32)
    return weight, bias


if __name__ == "__main__":
    feature_dim = 32
    label_dim = 8
    batch = 4

    key = jax.random.PRNGKey(0)
    xkey, pkey = jax.random.split(key)

    x = jax.random.normal(xkey, (batch, feature_dim), dtype=jnp.float32)
    weight, bias = _torch_linear_init(pkey, feature_dim, label_dim)

    y = lr_classifier(x, weight, bias)            # bf16 MXU path (default)
    y = jax.block_until_ready(y)

    # Reference check against plain JAX (bf16 MXU inputs -> loosened tolerance).
    y_ref = jax.nn.sigmoid(x @ weight.T + bias)
    assert y.shape == (batch, label_dim)
    assert jnp.allclose(y, y_ref, atol=2e-2, rtol=2e-2), (
        float(jnp.max(jnp.abs(y - y_ref))))

    print("KERNEL_OK")
</pallas_src>

<mosaic_0001>
module attributes {stable_mosaic.version = 11 : i64} {
  func.func @_lr_kernel(%arg0: i32, %arg1: memref<8x32xf32, #tpu.memory_space<vmem>>, %arg2: memref<32x128xbf16, #tpu.memory_space<vmem>>, %arg3: memref<1x128xf32, #tpu.memory_space<vmem>>, %arg4: memref<8x8xf32, #tpu.memory_space<vmem>>) attributes {dimension_semantics = [#tpu.dimension_semantics<parallel>], iteration_bounds = array<i64: 1>, scalar_prefetch = 0 : i64, scratch_operands = 0 : i64, tpu.core_type = #tpu.core_type<tc>, window_params = [{transform_indices = @transform_0, window_bounds = array<i64: 8, 32>}, {pipeline_mode = #tpu.pipeline_mode<synchronous>, transform_indices = @transform_1, window_bounds = array<i64: 32, 128>}, {pipeline_mode = #tpu.pipeline_mode<synchronous>, transform_indices = @transform_2, window_bounds = array<i64: 1, 128>}, {transform_indices = @transform_3, window_bounds = array<i64: 8, 8>}]} {
    %c0 = arith.constant 0 : index
    %c0_0 = arith.constant 0 : index
    %0 = vector.load %arg1[%c0, %c0_0] : memref<8x32xf32, #tpu.memory_space<vmem>>, vector<8x32xf32>
    %1 = arith.truncf %0 : vector<8x32xf32> to vector<8x32xbf16>
    %c0_1 = arith.constant 0 : index
    %c0_2 = arith.constant 0 : index
    %2 = vector.load %arg2[%c0_1, %c0_2] : memref<32x128xbf16, #tpu.memory_space<vmem>>, vector<32x128xbf16>
    %cst = arith.constant dense<0.000000e+00> : vector<8x128xf32>
    %3 = tpu.matmul %1, %2, %cst {dimension_numbers = #tpu.dot_dimension_numbers<[1], [0], [0], [1], [0, 0, 1, 1], [], []>} : vector<8x32xbf16>, vector<32x128xbf16>, vector<8x128xf32> -> vector<8x128xf32>
    %c0_3 = arith.constant 0 : index
    %c0_4 = arith.constant 0 : index
    %4 = vector.load %arg3[%c0_3, %c0_4] : memref<1x128xf32, #tpu.memory_space<vmem>>, vector<1x128xf32>
    %5 = vector.broadcast %4 : vector<1x128xf32> to vector<8x128xf32>
    %6 = arith.addf %3, %5 : vector<8x128xf32>
    %7 = vector.extract_strided_slice %6 {offsets = [0, 0], sizes = [8, 8], strides = [1, 1]} : vector<8x128xf32> to vector<8x8xf32>
    %cst_5 = arith.constant 5.000000e-01 : f32
    %8 = vector.broadcast %cst_5 : f32 to vector<8x8xf32>
    %9 = arith.mulf %8, %7 : vector<8x8xf32>
    %10 = math.tanh %9 : vector<8x8xf32>
    %cst_6 = arith.constant 5.000000e-01 : f32
    %11 = vector.broadcast %cst_6 : f32 to vector<8x8xf32>
    %12 = arith.mulf %11, %10 : vector<8x8xf32>
    %cst_7 = arith.constant 5.000000e-01 : f32
    %13 = vector.broadcast %cst_7 : f32 to vector<8x8xf32>
    %14 = arith.addf %12, %13 : vector<8x8xf32>
    %c0_8 = arith.constant 0 : index
    %c0_9 = arith.constant 0 : index
    %15 = vector.load %arg4[%c0_8, %c0_9] : memref<8x8xf32, #tpu.memory_space<vmem>>, vector<8x8xf32>
    tpu.vector_store %arg4[%c0_8, %c0_9], %14 {strides = array<i32>} : memref<8x8xf32, #tpu.memory_space<vmem>>, vector<8x8xf32>,
    return
  }
  func.func @transform_0(%arg0: i32) -> (i32, i32) {
    %c0_i32 = arith.constant 0 : i32
    %c0_i32_0 = arith.constant 0 : i32
    return %arg0, %c0_i32 : i32, i32
  }
  func.func @transform_1(%arg0: i32) -> (i32, i32) {
    %c0_i32 = arith.constant 0 : i32
    %c0_i32_0 = arith.constant 0 : i32
    %c0_i32_1 = arith.constant 0 : i32
    return %c0_i32, %c0_i32_0 : i32, i32
  }
  func.func @transform_2(%arg0: i32) -> (i32, i32) {
    %c0_i32 = arith.constant 0 : i32
    %c0_i32_0 = arith.constant 0 : i32
    %c0_i32_1 = arith.constant 0 : i32
    return %c0_i32, %c0_i32_0 : i32, i32
  }
  func.func @transform_3(%arg0: i32) -> (i32, i32) {
    %c0_i32 = arith.constant 0 : i32
    %c0_i32_0 = arith.constant 0 : i32
    return %arg0, %c0_i32 : i32, i32
  }
}

</mosaic_0001>

<bundles_post_ra>
// kernel: lr_classifier_prepared.1
= control target key start
LH: loop header
LB: loop body
LE: loop exit
PB: predicated region body
PF: predicated region fallthrough
CT: control target
= control target key end

     0   :  { %8 = vsyncpa [#allocation3], 0  ;;  %s310_s0 = inlined_call_operand.hbm [shape: f32[4,32], index: 0, kind: input, shape index: {}]   ;;  %s311_s1 = inlined_call_operand.hbm [shape: bf16[32,128], index: 1, kind: input, shape index: {}]   ;;  %s312_s2 = inlined_call_operand.vmem [shape: f32[1,128], index: 2, kind: input, shape index: {}]   ;;  %s313_s3 = inlined_call_operand.hbm [shape: f32[4,8], index: 3, kind: output, shape index: {}]  }
   0x1   :  { %9 = vsyncpa [#allocation6], 0 }
   0x2   :  { %10 = vsyncpa [#allocation4], 0 }
   0x3   :  { %15 = vsyncadd [#allocation3], 64  ;;  %s235_s12 = smov [#allocation2]   ;;  %s163_s16 = scalar_lea.hbm %s310_s0, 64 }
   0x4   :  { %s16_s13 = sshll.u32 %s235_s12, 4  ;;  %p164_p0 = scmp.ne.s32.totalorder %s310_s0, %s163_s16  ;;  %s17_s13 = int_to_ptr.vmem [resolvable:$true] %s16_s13 }
   0x5   :  { %p167_p1 = scmp.lt.u32.totalorder %s163_s16, %s310_s0 }
   0x7   :  { %p169_p2 = pnand %p167_p1, %p164_p0 }
   0x9   :  { %172 = shalt.err (!%p169_p2)
}
   0xa   :  { %s173_s21 = scalar_lea.vmem %s17_s13, 64  ;;  %s177_s22 = scalar_lea.vmem %s17_s13, 128 }
   0xb   :  { %p174_p3 = scmp.ne.s32.totalorder %s17_s13, %s173_s21  ;;  %p178_p4 = scmp.lt.s32.totalorder %s17_s13, %s17_s13 }
   0xc   :  { %p179_p5 = scmp.lt.s32.totalorder %s177_s22, %s173_s21 }
   0xe   :  { %p180_p6 = por %p179_p5, %p178_p4 }
  0x10   :  { %p181_p7 = pnand %p180_p6, %p174_p3 }
  0x12   :  { %184 = shalt.err (!%p181_p7)
}
  0x13   :  { %s236_s23 = smov 64   ;;  %s237_s24 = smov 4  }
  0x14   :  { %22 = dma.hbm_to_vmem [thread:$0]  %s310_s0, 64, %s17_s13, [#allocation3], %s236_s23, %s236_s23, %s237_s24  }
  0x15   :  { %s238_s27 = smov [#allocation5]   ;;  %s185_s4 = scalar_lea.hbm %s311_s1, 256 }
  0x16   :  { %s28_s28 = sshll.u32 %s238_s27, 4  ;;  %p186_p8 = scmp.ne.s32.totalorder %s311_s1, %s185_s4  ;;  %s29_s28 = int_to_ptr.vmem [resolvable:$true] %s28_s28 }
  0x17   :  { %p189_p9 = scmp.lt.u32.totalorder %s185_s4, %s311_s1 }
  0x19   :  { %p191_p10 = pnand %p189_p9, %p186_p8 }
  0x1b   :  { %194 = shalt.err (!%p191_p10)
}
  0x1c   :  { %s195_s9 = scalar_lea.vmem %s29_s28, 256  ;;  %p200_p12 = scmp.lt.s32.totalorder %s29_s28, %s29_s28 }
  0x1d   :  { %p196_p11 = scmp.ne.s32.totalorder %s29_s28, %s195_s9  ;;  %p201_p13 = scmp.lt.s32.totalorder %s195_s9, %s195_s9 }
  0x1f   :  { %p202_p0 = por %p201_p13, %p200_p12 }
  0x21   :  { %p203_p1 = pnand %p202_p0, %p196_p11 }
  0x23   :  { %206 = shalt.err (!%p203_p1)
}
  0x24   :  { %34 = dma.hbm_to_vmem [thread:$0]  %s311_s1, 256, %s29_s28, [#allocation6], %s236_s23, %s236_s23, %s237_s24  }
  0x25   :  { %229 = dma.done.wait [#allocation3], 128  }
  0x26   :  { %230 = vsyncadd [#allocation3], 4294967168 }
  0x27   :  { %231 = dma.done.wait [#allocation6], 256  }
  0x28   :  { %232 = vsyncadd [#allocation6], 4294967040  ;;  %v239_v0 = vmov 0.0   ;;  %vm240_vm0 = vmmov 0   ;;  %v159_v1 = vld [vmem:[#allocation5] sm:$0xff]   ;;  %v160_v2 = vld [vmem:[#allocation5 + $0x8] sm:$0xff]  }
  0x29   :  { %144 = vmatprep.subr.bf16.mxu0 %v239_v0  ;;  %148 = vmatprep.mubr.msk.bf16.mxu0 %vm240_vm0, %v239_v0  ;;  %v44_v3 = vld [vmem:[#allocation2] sm:$0xff]  ;;  %vm69_vm1 = vcmask 261120   ;;  %vm117_vm2 = vcmask 64512  }
  0x2a   :  { %145 = vmatpush3.bf16.msra.mxu0 %v159_v1  ;;  %v45_v4 = vpack.c.bf16 %v44_v3, %v44_v3  ;;  %v137_v5 = vld [vmem:[%s312_s2] ss:$0 sm:$0xff] }
  0x2b   :  { %146 = vmatprep.subr.bf16.mxu0 %v239_v0 }
  0x2e   :  { %147 = vmatpush3.bf16.msra.mxu0 %v160_v2 }
  0x31   :  { %149 = vmatmul.mubr.msk.bf16.vlgmr.msra.gmra.mrb[0].mxu0 %vm69_vm1, %v45_v4 }
 0x104   :  { %v107_v6 = vpop.f32.mrb[0].mxu0 }
 0x105   :  { %v108_v7 = vadd.f32 %v137_v5, %v107_v6  ;;  %v150_v8 = vpop.f32.mrb[1].mxu0 }
 0x106   :  { %v110_v9 = vpop.f32.mrb[2].mxu0 }
 0x107   :  { %v113_v10 = vmul.f32 0.5, %v108_v7  ;;  %v151_v11 = vpop.f32.mrb[3].mxu0 }
 0x109   :  { %161 = vtanh.f32 %v113_v10 }
 0x113   :  { %v162_v12 = vpop.eup %161 }
 0x114   :  { %v115_v13 = vmul.f32 0.5, %v162_v12 }
 0x116   :  { %v116_v14 = vadd.f32 0.5, %v115_v13 }
 0x118   :  { %118 = vst.msk [vmem:[#allocation7] sm:$0xff] %vm117_vm2, %v116_v14 }
 0x119   :  { %123 = vsyncadd [#allocation4], 64  ;;  %s241_s1 = smov [#allocation7]  }
 0x11a   :  { %s124_s13 = sshll.u32 %s241_s1, 4  ;;  %s125_s13 = int_to_ptr.vmem [resolvable:$true] %s124_s13 }
 0x11b   :  { %s207_s14 = scalar_lea.vmem %s125_s13, 64  ;;  %s211_s15 = scalar_lea.vmem %s125_s13, 128 }
 0x11c   :  { %p208_p2 = scmp.ne.s32.totalorder %s125_s13, %s207_s14  ;;  %p212_p3 = scmp.lt.s32.totalorder %s125_s13, %s125_s13 }
 0x11d   :  { %p213_p4 = scmp.lt.s32.totalorder %s211_s15, %s207_s14 }
 0x11f   :  { %p214_p5 = por %p213_p4, %p212_p3 }
 0x121   :  { %p215_p6 = pnand %p214_p5, %p208_p2 }
 0x123   :  { %218 = shalt.err (!%p215_p6)
}
 0x124   :  { %s219_s17 = scalar_lea.hbm %s313_s3, 64 }
 0x125   :  { %p220_p7 = scmp.ne.s32.totalorder %s313_s3, %s219_s17  ;;  %p223_p8 = scmp.lt.u32.totalorder %s219_s17, %s313_s3 }
 0x127   :  { %p225_p9 = pnand %p223_p8, %p220_p7 }
 0x129   :  { %228 = shalt.err (!%p225_p9)
}
 0x12a   :  { %130 = dma.vmem_to_hbm [thread:$0]  %s125_s13, 64, %s313_s3, [#allocation4], %s236_s23, %s236_s23, %s237_s24  }
 0x12b   :  { %233 = dma.done.wait [#allocation4], 128  }
 0x12c   :  { %234 = vsyncadd [#allocation4], 4294967168 }
 0x12d   :  { %134 = vsyncpa [#allocation3], 1 }
 0x12e   :  { %135 = vsyncpa [#allocation6], 1 }
 0x12f   :  { %136 = vsyncpa [#allocation4], 1 }

</bundles_post_ra>
